<compile_context>
chip_gen: v7x
topology: tpu7x:2x2x1
jax: 0.10.0
libtpu: 0.0.40
codegen_flags: <defaults>
</compile_context>

<pallas_src>
import functools

import jax
import jax.numpy as jnp
from jax import lax
from jax.experimental import pallas as pl
from jax.experimental.pallas import tpu as pltpu

_LANE = 128
_SUBLANE = 8


def _cdiv(a, b):
    return -(-a // b)


def _round_up(v, m):
    return ((v + m - 1) // m) * m


@functools.lru_cache(maxsize=None)
def _vmem_plan():
    """(per-x-block byte budget, scoped vmem_limit_bytes), generation-aware."""
    try:
        cap = int(pltpu.get_tpu_info().vmem_capacity_bytes)
    except Exception:
        cap = 64 * 1024 * 1024  # conservative (v7x-sized) fallback
    # Double-buffered x blocks (2x budget) + output blocks + f32 accumulator must stay
    # well inside the scoped limit on every generation (v5e/v6e: 128 MiB, v7x: 64 MiB/TC).
    block_budget = max(4 * 1024 * 1024, cap // 6)
    vmem_limit = max(32 * 1024 * 1024, cap // 2)
    return block_budget, vmem_limit


def _select_tiles(B, N, C, itemsize, budget):
    """Pick (Bt, Nt, Tc): prefer full-C rows, shrink N, then fill the budget with batch."""
    pack = _SUBLANE * max(1, 4 // itemsize)  # 8 f32 / 16 bf16 / 32 int8 sublane packing

    # Channel tile: keep the full channel extent whenever a minimal (pack, 8, C) block
    # fits the budget (longest contiguous DMA runs); otherwise tile in 128-lane multiples.
    min_rows = pack * _SUBLANE
    if min_rows * C * itemsize <= budget:
        Tc = C
    else:
        Tc = max(_LANE, (budget // (min_rows * itemsize)) // _LANE * _LANE)

    # Node (reduction) tile: shrink N, never the channel row, to meet the budget.
    per_row = pack * Tc * itemsize
    Nt = (budget // per_row) // _SUBLANE * _SUBLANE
    Nt = max(_SUBLANE, min(N, Nt))
    if Nt >= N:
        Nt = N  # whole-N block -> single reduction step

    # Batch tile: fill the remaining budget to amortize per-grid-step overhead.
    per_b = Nt * Tc * itemsize
    Bt = max(pack, (budget // per_b) // pack * pack)
    Bt = min(Bt, _round_up(B, pack))

    # Keep >= 2 'parallel' blocks when possible so a second TensorCore (v7x) isn't idle.
    if _cdiv(B, Bt) * _cdiv(C, Tc) < 2 and B > pack:
        Bt = _round_up(_cdiv(B, 2), pack)
    return Bt, Nt, Tc


# ---------------- Pallas kernels (grid = (b, c, k); k = node-tile reduction axis) ----------------

def _masked_tail(xb, k, n_total, n_block, fill):
    # Zero/-inf out the out-of-range rows of the ragged last N tile (trace-time gated).
    if n_total % n_block != 0:
        idx = lax.broadcasted_iota(jnp.int32, xb.shape, 1)
        xb = jnp.where(k * n_block + idx < n_total, xb, fill)
    return xb


def _sum_kernel(x_ref, o_ref, acc_ref, *, n_total, n_block):
    k = pl.program_id(2)

    @pl.when(k == 0)
    def _():
        acc_ref[...] = jnp.zeros_like(acc_ref)

    xb = _masked_tail(x_ref[...].astype(jnp.float32), k, n_total, n_block, 0.0)
    acc_ref[...] += jnp.sum(xb, axis=1)

    @pl.when(k == pl.num_programs(2) - 1)
    def _():
        o_ref[...] = acc_ref[...].astype(o_ref.dtype)


def _mean_kernel(x_ref, inv_ref, o_ref, acc_ref, *, n_total, n_block):
    # mean = sum(x, dim=N) * (1 / sum(mask, dim=N)); reciprocal precomputed outside.
    k = pl.program_id(2)

    @pl.when(k == 0)
    def _():
        acc_ref[...] = jnp.zeros_like(acc_ref)

    xb = _masked_tail(x_ref[...].astype(jnp.float32), k, n_total, n_block, 0.0)
    acc_ref[...] += jnp.sum(xb, axis=1)

    @pl.when(k == pl.num_programs(2) - 1)
    def _():
        o_ref[...] = (acc_ref[...] * inv_ref[...]).astype(o_ref.dtype)


def _max_kernel(x_ref, o_ref, acc_ref, *, n_total, n_block):
    # PyTorch 'max' readout ignores the mask (torch.max(x, dim=1)[0]).
    k = pl.program_id(2)

    @pl.when(k == 0)
    def _():
        acc_ref[...] = jnp.full(acc_ref.shape, -jnp.inf, acc_ref.dtype)

    xb = _masked_tail(x_ref[...].astype(jnp.float32), k, n_total, n_block, -jnp.inf)
    acc_ref[...] = jnp.maximum(acc_ref[...], jnp.max(xb, axis=1))

    @pl.when(k == pl.num_programs(2) - 1)
    def _():
        o_ref[...] = acc_ref[...].astype(o_ref.dtype)


# ---------------- wrapper ----------------

@functools.partial(jax.jit, static_argnames=("pool_type", "block_budget_bytes"))
def _graph_readout_pooled(x, mask, pool_type, block_budget_bytes=None):
    B, N, C = x.shape
    itemsize = jnp.dtype(x.dtype).itemsize
    budget, vmem_limit = _vmem_plan()
    if block_budget_bytes is not None:
        budget = int(block_budget_bytes)
    Bt, Nt, Tc = _select_tiles(B, N, C, itemsize, budget)

    # Output over-allocated to grid coverage (tiny) so every store is in-bounds; x itself
    # is NOT padded -- ragged edge reads only land in the sliced-off output rows/cols.
    Bo = _cdiv(B, Bt) * Bt
    Co = _cdiv(C, Tc) * Tc
    grid = (_cdiv(B, Bt), _cdiv(C, Tc), _cdiv(N, Nt))  # reduction axis last ('arbitrary')

    x_spec = pl.BlockSpec((Bt, Nt, Tc), lambda b, c, k: (b, k, c))
    out_spec = pl.BlockSpec((Bt, Tc), lambda b, c, k: (b, c))
    out_shape = jax.ShapeDtypeStruct((Bo, Co), x.dtype)
    scratch = [pltpu.VMEM((Bt, Tc), jnp.float32)]
    cparams = pltpu.CompilerParams(
        dimension_semantics=("parallel", "parallel", "arbitrary"),
        vmem_limit_bytes=int(vmem_limit),
    )
    cost = pl.CostEstimate(
        flops=int(B * N * C),
        transcendentals=0,
        bytes_accessed=int(B * N * C * itemsize + B * C * itemsize),
    )

    if pool_type in ("mean", "avg"):
        # Per-batch reciprocal node count, computed once in plain JAX (tiny O(B*N) work).
        cnt = jnp.sum(mask.reshape(B, N).astype(jnp.float32), axis=1)  # (B,)
        inv = (1.0 / cnt).reshape(B, 1)  # matches torch semantics (inf if cnt == 0)
        if Bo != B:
            inv = jnp.pad(inv, ((0, Bo - B), (0, 0)))  # tiny; keeps inv reads in-bounds
        inv_spec = pl.BlockSpec((Bt, 1), lambda b, c, k: (b, 0))
        kernel = functools.partial(_mean_kernel, n_total=N, n_block=Nt)
        pooled = pl.pallas_call(
            kernel,
            out_shape=out_shape,
            grid=grid,
            in_specs=[x_spec, inv_spec],
            out_specs=out_spec,
            scratch_shapes=scratch,
            compiler_params=cparams,
            cost_estimate=cost,
        )(x, inv)
    elif pool_type in ("sum", "max"):
        kern = _sum_kernel if pool_type == "sum" else _max_kernel
        kernel = functools.partial(kern, n_total=N, n_block=Nt)
        pooled = pl.pallas_call(
            kernel,
            out_shape=out_shape,
            grid=grid,
            in_specs=[x_spec],
            out_specs=out_spec,
            scratch_shapes=scratch,
            compiler_params=cparams,
            cost_estimate=cost,
        )(x)
    else:
        raise NotImplementedError(pool_type)

    return pooled[:B, :C]


def graph_readout_forward(data, pool_type):
    """Mirrors GraphReadout.forward: data = [x, A, mask, ...] -> [pooled_x, A, mask, ...]."""
    x, A, mask = data[:3]
    pooled = _graph_readout_pooled(x, mask, pool_type=pool_type)
    output = [pooled]
    output.extend(data[1:])
    return output


# ---------------- reference (plain JAX) for sanity check ----------------

def _reference_pool(x, mask, pool_type):
    B, N, C = x.shape
    m = mask.reshape(B, N, 1).astype(jnp.float32)
    if pool_type == "max":
        return jnp.max(x, axis=1)
    if pool_type in ("mean", "avg"):
        return jnp.sum(x, axis=1) / jnp.sum(m, axis=1)
    if pool_type == "sum":
        return jnp.sum(x, axis=1)
    raise NotImplementedError(pool_type)


# ---------------- main ----------------

if __name__ == "__main__":
    key = jax.random.PRNGKey(0)
    kx, ka, km = jax.random.split(key, 3)

    B, N, C = 2, 16, 32
    x = jax.random.normal(kx, (B, N, C), dtype=jnp.float32)
    A = jax.random.normal(ka, (B, N, N), dtype=jnp.float32)
    # 0/1 node mask; guarantee at least one valid node per graph so 'mean' is well-defined
    mask = (jax.random.uniform(km, (B, N)) > 0.3).astype(jnp.float32)
    mask = mask.at[:, 0].set(1.0)

    data = [x, A, mask]

    ok = True
    for pool_type in ("max", "mean", "avg", "sum"):
        out = graph_readout_forward(data, pool_type)
        pooled = jax.block_until_ready(out[0])
        assert pooled.shape == (B, C), pooled.shape
        ref = _reference_pool(x, mask, pool_type)
        ok = ok and bool(jnp.allclose(pooled, ref, atol=1e-5, rtol=1e-5))
        # the rest of `data` passes through untouched
        assert out[1] is A and out[2] is mask

    # Also exercise the N-tiled accumulator path (ragged last node tile) by forcing a tiny
    # per-block budget on a shape with N not a multiple of the node tile.
    B2, N2, C2 = 2, 20, 32
    x2 = jax.random.normal(kx, (B2, N2, C2), dtype=jnp.float32)
    mask2 = (jax.random.uniform(km, (B2, N2)) > 0.3).astype(jnp.float32)
    mask2 = mask2.at[:, 0].set(1.0)
    for pool_type in ("max", "mean", "sum"):
        pooled2 = jax.block_until_ready(
            _graph_readout_pooled(x2, mask2, pool_type=pool_type, block_budget_bytes=8192))
        ref2 = _reference_pool(x2, mask2, pool_type)
        ok = ok and bool(jnp.allclose(pooled2, ref2, atol=1e-5, rtol=1e-5))

    if ok:
        print("KERNEL_OK")
</pallas_src>

<mosaic_0001>
module attributes {stable_mosaic.version = 11 : i64} {
  func.func @_max_kernel(%arg0: i32, %arg1: i32, %arg2: i32, %arg3: memref<8x16x32xf32, #tpu.memory_space<vmem>>, %arg4: memref<8x32xf32, #tpu.memory_space<vmem>>, %arg5: memref<8x32xf32, #tpu.memory_space<vmem>>) attributes {dimension_semantics = [#tpu.dimension_semantics<parallel>, #tpu.dimension_semantics<parallel>, #tpu.dimension_semantics<arbitrary>], iteration_bounds = array<i64: 1, 1, 1>, scalar_prefetch = 0 : i64, scratch_operands = 1 : i64, tpu.core_type = #tpu.core_type<tc>, window_params = [{transform_indices = @transform_0, window_bounds = array<i64: 8, 16, 32>}, {transform_indices = @transform_1, window_bounds = array<i64: 8, 32>}]} {
    %c0_i32 = arith.constant 0 : i32
    %0 = arith.cmpi eq, %arg2, %c0_i32 : i32
    %1 = arith.extui %0 : i1 to i32
    %c0_i32_0 = arith.constant 0 : i32
    %2 = arith.cmpi ne, %1, %c0_i32_0 : i32
    scf.if %2 {
      %cst_9 = arith.constant 0xFF800000 : f32
      %11 = vector.broadcast %cst_9 : f32 to vector<8x32xf32>
      %c0_10 = arith.constant 0 : index
      %c0_11 = arith.constant 0 : index
      %12 = vector.load %arg5[%c0_10, %c0_11] : memref<8x32xf32, #tpu.memory_space<vmem>>, vector<8x32xf32>
      tpu.vector_store %arg5[%c0_10, %c0_11], %11 {strides = array<i32>} : memref<8x32xf32, #tpu.memory_space<vmem>>, vector<8x32xf32>,
    } else {
    }
    %c0 = arith.constant 0 : index
    %c0_1 = arith.constant 0 : index
    %c0_2 = arith.constant 0 : index
    %3 = vector.load %arg3[%c0, %c0_1, %c0_2] : memref<8x16x32xf32, #tpu.memory_space<vmem>>, vector<8x16x32xf32>
    %c0_3 = arith.constant 0 : index
    %c0_4 = arith.constant 0 : index
    %4 = vector.load %arg5[%c0_3, %c0_4] : memref<8x32xf32, #tpu.memory_space<vmem>>, vector<8x32xf32>
    %cst = arith.constant dense<0xFF800000> : vector<8x32xf32>
    %5 = vector.multi_reduction <maximumf>, %3, %cst [1] : vector<8x16x32xf32> to vector<8x32xf32>
    %6 = arith.maximumf %4, %5 : vector<8x32xf32>
    %c0_5 = arith.constant 0 : index
    %c0_6 = arith.constant 0 : index
    %7 = vector.load %arg5[%c0_5, %c0_6] : memref<8x32xf32, #tpu.memory_space<vmem>>, vector<8x32xf32>
    tpu.vector_store %arg5[%c0_5, %c0_6], %6 {strides = array<i32>} : memref<8x32xf32, #tpu.memory_space<vmem>>, vector<8x32xf32>,
    %c0_i32_7 = arith.constant 0 : i32
    %8 = arith.cmpi eq, %arg2, %c0_i32_7 : i32
    %9 = arith.extui %8 : i1 to i32
    %c0_i32_8 = arith.constant 0 : i32
    %10 = arith.cmpi ne, %9, %c0_i32_8 : i32
    scf.if %10 {
      %c0_9 = arith.constant 0 : index
      %c0_10 = arith.constant 0 : index
      %11 = vector.load %arg5[%c0_9, %c0_10] : memref<8x32xf32, #tpu.memory_space<vmem>>, vector<8x32xf32>
      %c0_11 = arith.constant 0 : index
      %c0_12 = arith.constant 0 : index
      %12 = vector.load %arg4[%c0_11, %c0_12] : memref<8x32xf32, #tpu.memory_space<vmem>>, vector<8x32xf32>
      tpu.vector_store %arg4[%c0_11, %c0_12], %11 {strides = array<i32>} : memref<8x32xf32, #tpu.memory_space<vmem>>, vector<8x32xf32>,
    } else {
    }
    return
  }
  func.func @transform_0(%arg0: i32, %arg1: i32, %arg2: i32) -> (i32, i32, i32) {
    %c0_i32 = arith.constant 0 : i32
    return %arg0, %arg2, %arg1 : i32, i32, i32
  }
  func.func @transform_1(%arg0: i32, %arg1: i32, %arg2: i32) -> (i32, i32) {
    %c0_i32 = arith.constant 0 : i32
    return %arg0, %arg1 : i32, i32
  }
}

</mosaic_0001>

<bundles_post_ra>
// kernel: _graph_readout_pooled.1
= control target key start
LH: loop header
LB: loop body
LE: loop exit
PB: predicated region body
PF: predicated region fallthrough
CT: control target
= control target key end

     0   :  { %6 = vsyncpa [#allocation4], 0  ;;  %s231_s0 = inlined_call_operand.hbm [shape: f32[2,16,32], index: 0, kind: input, shape index: {}]   ;;  %s232_s1 = inlined_call_operand.vmem [shape: f32[8,32], index: 1, kind: output, shape index: {}]  }
   0x1   :  { %11 = vsyncadd [#allocation4], 1536  ;;  %s181_s6 = smov [#allocation3]   ;;  %s157_s10 = scalar_lea.hbm %s231_s0, 512 }
   0x2   :  { %s12_s7 = sshll.u32 %s181_s6, 4  ;;  %p158_p0 = scmp.ne.s32.totalorder %s231_s0, %s157_s10  ;;  %s13_s7 = int_to_ptr.vmem [resolvable:$true] %s12_s7 }
   0x3   :  { %p161_p1 = scmp.lt.u32.totalorder %s157_s10, %s231_s0 }
   0x5   :  { %p163_p2 = pnand %p161_p1, %p158_p0 }
   0x7   :  { %166 = shalt.err (!%p163_p2)
}
   0x8   :  { %s167_s15 = scalar_lea.vmem %s13_s7, 512  ;;  %s171_s16 = scalar_lea.vmem %s13_s7, 2048 }
   0x9   :  { %p168_p3 = scmp.ne.s32.totalorder %s13_s7, %s167_s15  ;;  %p172_p4 = scmp.lt.s32.totalorder %s13_s7, %s13_s7 }
   0xa   :  { %p173_p5 = scmp.lt.s32.totalorder %s171_s16, %s167_s15 }
   0xc   :  { %p174_p6 = por %p173_p5, %p172_p4 }
   0xe   :  { %p175_p7 = pnand %p174_p6, %p168_p3 }
  0x10   :  { %178 = shalt.err (!%p175_p7)
}
  0x11   :  { %s182_s17 = smov 128   ;;  %s183_s18 = smov 8  }
  0x12   :  { %18 = dma.hbm_to_vmem [thread:$0]  %s231_s0, 512, %s13_s7, [#allocation4], %s182_s17, %s182_s17, %s183_s18  }
  0x13   :  { %179 = dma.done.wait [#allocation4], 2048  }
  0x14   :  { %180 = vsyncadd [#allocation4], 4294965248  ;;  %vm26_vm0 = vcmask 261120   ;;  %v184_v0 = vmov -inf   ;;  %v28_v1 = vld [vmem:[#allocation3] sm:$0xff]  ;;  %v29_v2 = vld [vmem:[#allocation3 + $0x8] sm:$0xff] }
  0x15   :  { %27 = vst.msk [vmem:[#allocation2] sm:$0xff] %vm26_vm0, %v184_v0  ;;  %v30_v3 = vld [vmem:[#allocation3 + $0x10] sm:$0xff]  ;;  %v31_v4 = vld [vmem:[#allocation3 + $0x18] sm:$0xff]  ;;  %v32_v5 = vld [vmem:[#allocation3 + $0x20] sm:$0xff]  ;;  %v46_v7 = vsel %vm26_vm0, %v28_v1, -inf  ;;  %v47_v8 = vsel %vm26_vm0, %v29_v2, -inf }
  0x16   :  { %v33_v6 = vld [vmem:[#allocation3 + $0x28] sm:$0xff]  ;;  %v55_v9 = vsel %vm26_vm0, %v30_v3, -inf  ;;  %v34_v10 = vld [vmem:[#allocation3 + $0x30] sm:$0xff]  ;;  %v35_v11 = vld [vmem:[#allocation3 + $0x38] sm:$0xff]  ;;  %v48_v13 = vmax.f32 %v46_v7, %v47_v8  ;;  %v56_v14 = vsel %vm26_vm0, %v31_v4, -inf  ;;  %v64_v15 = vsel %vm26_vm0, %v32_v5, -inf }
  0x17   :  { %v36_v12 = vld [vmem:[#allocation3 + $0x40] sm:$0xff]  ;;  %v65_v16 = vsel %vm26_vm0, %v33_v6, -inf  ;;  %v37_v17 = vld [vmem:[#allocation3 + $0x48] sm:$0xff]  ;;  %v38_v18 = vld [vmem:[#allocation3 + $0x50] sm:$0xff]  ;;  %v57_v20 = vmax.f32 %v55_v9, %v56_v14  ;;  %v73_v22 = vsel %vm26_vm0, %v34_v10, -inf  ;;  %v74_v23 = vsel %vm26_vm0, %v35_v11, -inf }
  0x18   :  { %v39_v19 = vld [vmem:[#allocation3 + $0x58] sm:$0xff]  ;;  %v66_v21 = vmax.f32 %v64_v15, %v65_v16  ;;  %v40_v24 = vld [vmem:[#allocation3 + $0x60] sm:$0xff]  ;;  %v49_v25 = vrot.slane %v48_v13, 4  ;;  %v75_v26 = vmax.f32 %v73_v22, %v74_v23  ;;  %v82_v27 = vsel %vm26_vm0, %v36_v12, -inf  ;;  %v41_v29 = vld [vmem:[#allocation3 + $0x68] sm:$0xff] }
  0x19   :  { %v83_v28 = vsel %vm26_vm0, %v37_v17, -inf  ;;  %v42_v30 = vld [vmem:[#allocation3 + $0x70] sm:$0xff]  ;;  %v58_v31 = vrot.slane %v57_v20, 4  ;;  %v91_v34 = vsel %vm26_vm0, %v38_v18, -inf  ;;  %v92_v37 = vsel %vm26_vm0, %v39_v19, -inf  ;;  %v43_v39 = vld [vmem:[#allocation3 + $0x78] sm:$0xff] }
  0x1a   :  { %v67_v32 = vrot.slane %v66_v21, 4  ;;  %v84_v33 = vmax.f32 %v82_v27, %v83_v28  ;;  %v50_v35 = vmax.f32 %v48_v13, %v49_v25  ;;  %v76_v36 = vrot.slane %v75_v26, 4 }
  0x1b   :  { %v100_v38 = vsel %vm26_vm0, %v40_v24, -inf  ;;  %vm126_vm1 = vcmask 1041409   ;;  %v59_v40 = vmax.f32 %v57_v20, %v58_v31  ;;  %v93_v43 = vmax.f32 %v91_v34, %v92_v37 }
  0x1c   :  { %v68_v41 = vmax.f32 %v66_v21, %v67_v32  ;;  %v85_v42 = vrot.slane %v84_v33, 4  ;;  %vm128_vm2 = vcmask 1042434   ;;  %v51_v44 = vrot.slane %v50_v35, 2 }
  0x1d   :  { %v77_v45 = vmax.f32 %v75_v26, %v76_v36  ;;  %v101_v46 = vsel %vm26_vm0, %v41_v29, -inf  ;;  %v109_v47 = vsel %vm26_vm0, %v42_v30, -inf  ;;  %v60_v48 = vrot.slane %v59_v40, 2  ;;  %v44_v29 = vld [vmem:[#allocation2] sm:$0xff] }
  0x1e   :  { %v69_v49 = vrot.slane %v68_v41, 2  ;;  %v86_v50 = vmax.f32 %v84_v33, %v85_v42  ;;  %v94_v51 = vrot.slane %v93_v43, 4  ;;  %v52_v52 = vmax.f32 %v50_v35, %v51_v44 }
  0x1f   :  { %v78_v53 = vrot.slane %v77_v45, 2  ;;  %v102_v54 = vmax.f32 %v100_v38, %v101_v46  ;;  %v110_v55 = vsel %vm26_vm0, %v43_v39, -inf  ;;  %v61_v56 = vmax.f32 %v59_v40, %v60_v48 }
  0x20   :  { %v70_v57 = vmax.f32 %v68_v41, %v69_v49  ;;  %v87_v58 = vrot.slane %v86_v50, 2  ;;  %v95_v59 = vmax.f32 %v93_v43, %v94_v51  ;;  %v53_v60 = vrot.slane %v52_v52, 1 }
  0x21   :  { %v79_v61 = vmax.f32 %v77_v45, %v78_v53  ;;  %v103_v62 = vrot.slane %v102_v54, 4  ;;  %v111_v63 = vmax.f32 %v109_v47, %v110_v55  ;;  %v62_v0 = vrot.slane %v61_v56, 1 }
  0x22   :  { %v71_v1 = vrot.slane %v70_v57, 1  ;;  %v88_v2 = vmax.f32 %v86_v50, %v87_v58  ;;  %v96_v3 = vrot.slane %v95_v59, 2  ;;  %v54_v4 = vmax.f32 %v52_v52, %v53_v60 }
  0x23   :  { %v80_v5 = vrot.slane %v79_v61, 1  ;;  %v104_v6 = vmax.f32 %v102_v54, %v103_v62  ;;  %v112_v7 = vrot.slane %v111_v63, 4  ;;  %v63_v8 = vmax.f32 %v61_v56, %v62_v0 }
  0x24   :  { %v72_v9 = vmax.f32 %v70_v57, %v71_v1  ;;  %v89_v10 = vrot.slane %v88_v2, 1  ;;  %v97_v11 = vmax.f32 %v95_v59, %v96_v3  ;;  %vm130_vm3 = vcmask 1043459  }
  0x25   :  { %v81_v12 = vmax.f32 %v79_v61, %v80_v5  ;;  %v105_v13 = vrot.slane %v104_v6, 2  ;;  %v113_v14 = vmax.f32 %v111_v63, %v112_v7  ;;  %v127_v17 = vsel %vm126_vm1, %v63_v8, %v54_v4 }
  0x26   :  { %v90_v15 = vmax.f32 %v88_v2, %v89_v10  ;;  %v98_v16 = vrot.slane %v97_v11, 1  ;;  %vm132_vm4 = vcmask 1044484   ;;  %v129_v20 = vsel %vm128_vm2, %v72_v9, %v127_v17 }
  0x27   :  { %v106_v18 = vmax.f32 %v104_v6, %v105_v13  ;;  %v114_v19 = vrot.slane %v113_v14, 2  ;;  %vm134_vm5 = vcmask 1045509   ;;  %v131_v22 = vsel %vm130_vm3, %v81_v12, %v129_v20 }
  0x28   :  { %v99_v21 = vmax.f32 %v97_v11, %v98_v16  ;;  %v133_v25 = vsel %vm132_vm4, %v90_v15, %v131_v22  ;;  %vm136_vm6 = vcmask 1046534   ;;  %vm138_vm7 = vcmask 1047559  }
  0x29   :  { %v107_v23 = vrot.slane %v106_v18, 1  ;;  %v115_v24 = vmax.f32 %v113_v14, %v114_v19 }
  0x2a   :  { %v135_v26 = vsel %vm134_vm5, %v99_v21, %v133_v25 }
  0x2b   :  { %v108_v27 = vmax.f32 %v106_v18, %v107_v23  ;;  %v116_v28 = vrot.slane %v115_v24, 1 }
  0x2d   :  { %v117_v30 = vmax.f32 %v115_v24, %v116_v28  ;;  %v137_v31 = vsel %vm136_vm6, %v108_v27, %v135_v26 }
  0x2f   :  { %v139_v32 = vsel %vm138_vm7, %v117_v30, %v137_v31 }
  0x30   :  { %v141_v33 = vmax.f32 %v44_v29, %v139_v32 }
  0x32   :  { %142 = vst.msk [vmem:[#allocation2] sm:$0xff] %vm26_vm0, %v141_v33 }
  0x39   :  { %v146_v34 = vld [vmem:[#allocation2] sm:$0xff] }
  0x3a   :  { %147 = vst.msk [vmem:[%s232_s1] sm:$0xff] %vm26_vm0, %v146_v34 }
  0x3b   :  { %152 = vsyncpa [#allocation4], 1 }

</bundles_post_ra>
